<compile_context>
chip_gen: v6e
topology: v6e:2x2x1
jax: 0.10.0
libtpu: 0.0.40
codegen_flags: <defaults>
</compile_context>

<pallas_src>
import math

import jax
import jax.numpy as jnp
from jax import lax
from jax.experimental import pallas as pl
from jax.experimental.pallas import tpu as pltpu


def _round_up(a, m):
    return ((a + m - 1) // m) * m


def _make_kernel(dims, nx, tile, batch, batch_ref, total_tiles, steps_per_half,
                 mxu_dtype):
    """dims = [D, H0, ..., H_last, 1]."""
    num_linear = len(dims) - 1
    n_hidden = num_linear - 1            # layers that run on the MXU
    h_last = dims[-2]

    def kernel(data_ref, *rest):
        w_refs = rest[:n_hidden]
        vpack_ref = rest[n_hidden]
        out_ref = rest[n_hidden + 1]
        sum_ref, m_ref, l_ref = rest[n_hidden + 2:]

        half = pl.program_id(0)          # TensorCore shard (megacore on v7x)
        j = pl.program_id(1)             # streaming step within the shard

        @pl.when(j == 0)
        def _init():
            sum_ref[...] = jnp.zeros(sum_ref.shape, jnp.float32)
            l_ref[...] = jnp.zeros(l_ref.shape, jnp.float32)
            m_ref[...] = jnp.full(m_ref.shape, -1e30, jnp.float32)

        g_raw = half * steps_per_half + j          # global tile index
        tile_valid = g_raw < total_tiles           # padded no-op step?
        g = jnp.minimum(g_raw, total_tiles - 1)
        is_x = g < nx                              # x tile vs xref tile

        # Hidden layers on the MXU (native dtype inputs, f32 accumulation).
        h = data_ref[...]
        for li in range(n_hidden):
            w = w_refs[li][...]
            b = vpack_ref[1 + li:2 + li, :dims[li + 1]]
            h = jnp.dot(h.astype(mxu_dtype), w,
                        preferred_element_type=jnp.float32) + b
            h = jnp.maximum(h, 0.0)                # ReLU

        # Final H_last -> 1 layer on VPU/XLU.  The final bias cancels exactly
        # in -(mean_f - log_mean_ef_ref), so it is dropped entirely.
        w_last = vpack_ref[0:1, :h_last]
        scores = jnp.sum(h.astype(jnp.float32) * w_last,
                         axis=-1, keepdims=True)             # (tile, 1)

        rows = (jnp.where(is_x, g, g - nx) * tile
                + lax.broadcasted_iota(jnp.int32, (tile, 1), 0))
        limit = jnp.where(is_x, batch, batch_ref)
        valid = jnp.logical_and(rows < limit, tile_valid)

        @pl.when(is_x)
        def _acc_mean():                 # running sum for mean(net(x))
            sum_ref[...] += jnp.sum(jnp.where(valid, scores, 0.0),
                                    axis=0, keepdims=True)

        @pl.when(jnp.logical_not(is_x))
        def _acc_lse():                  # online logsumexp for net(xref)
            s = jnp.where(valid, scores, -jnp.inf)
            m_old = m_ref[...]
            m_new = jnp.maximum(m_old, jnp.max(s, axis=0, keepdims=True))
            l_ref[...] = (jnp.exp(m_old - m_new) * l_ref[...]
                          + jnp.sum(jnp.exp(s - m_new), axis=0, keepdims=True))
            m_ref[...] = m_new

        @pl.when(j == steps_per_half - 1)
        def _finalize():                 # pack this shard's partials
            slot = lax.broadcasted_iota(jnp.int32, (1, 8, 128), 1)
            out_ref[...] = (jnp.where(slot == 0, sum_ref[...], 0.0)
                            + jnp.where(slot == 1, m_ref[...], 0.0)
                            + jnp.where(slot == 2, l_ref[...], 0.0))

    return kernel


def h_nee_forward(x, xref, params, *, compute_dtype=None, input_buffers=2,
                  max_tile_rows=None):
    """params: list of (W, b), W: (in, out), b: (1, out).  Returns shape (1,)."""
    batch, in_dim = x.shape
    batch_ref, in_dim_r = xref.shape
    assert in_dim == in_dim_r
    assert batch >= 1 and batch_ref >= 1
    num_linear = len(params)
    assert num_linear >= 2
    dims = [in_dim] + [int(w.shape[1]) for (w, _) in params]
    assert dims[-1] == 1
    n_hidden = num_linear - 1
    h_last = dims[-2]

    # MXU compute dtype: native input dtype unless explicitly overridden
    # (e.g. compute_dtype=jnp.bfloat16 to downcast f32 inputs on v5e).
    mxu_dtype = (jnp.dtype(compute_dtype) if compute_dtype is not None
                 else jnp.dtype(x.dtype))
    itemsize = mxu_dtype.itemsize
    sub = max(8, 32 // itemsize)           # dtype-native sublane multiple

    # Generation-aware VMEM budget (128 MiB on v5e/v6e, 64 MiB per TC on v7x).
    try:
        info = pltpu.get_tpu_info()
        vmem_phys = int(getattr(info, "vmem_capacity_bytes", 0)) or (64 << 20)
    except Exception:
        vmem_phys = 64 << 20
    vmem_cap = min(int(0.8 * vmem_phys), 112 << 20)

    # Parameter footprint (weights in MXU dtype, packed vector params in f32).
    maxlen = _round_up(max(dims[1:-1]), 128)
    weight_bytes = sum(dims[i] * dims[i + 1] for i in range(n_hidden)) * itemsize
    vpack_bytes = (1 + n_hidden) * maxlen * 4
    param_bytes = weight_bytes + vpack_bytes

    # Row tile sized by a byte budget (MiB-scale tiles reach the HBM roofline),
    # rounded to the sublane multiple, shrunk until the VMEM budget fits.
    target_tile_bytes = (2 << 20) if vmem_phys <= (64 << 20) else (4 << 20)
    tile = max(sub, (target_tile_bytes // max(1, in_dim * itemsize)) // sub * sub)
    tile = min(tile, _round_up(max(batch, batch_ref), sub))
    if max_tile_rows is not None:
        tile = min(tile, max(sub, (int(max_tile_rows) // sub) * sub))
    act_cols = max(dims[i] + dims[i + 1] for i in range(num_linear))

    def vmem_need(t):
        in_b = max(2, int(input_buffers)) * t * in_dim * itemsize
        act_b = t * act_cols * 4
        return in_b + 2 * param_bytes + act_b + (2 << 20)

    while tile > sub and vmem_need(tile) > vmem_cap:
        tile = max(sub, ((tile // 2) // sub) * sub)
    vmem_limit = int(min(vmem_cap, max(16 << 20, int(1.25 * vmem_need(tile)))))

    # Pad each stream to a tile multiple and concatenate into ONE streamed
    # input (single input spec, no per-step stream select).
    bp = _round_up(batch, tile)
    brefp = _round_up(batch_ref, tile)
    data = jnp.concatenate(
        [jnp.pad(x.astype(mxu_dtype), ((0, bp - batch), (0, 0))),
         jnp.pad(xref.astype(mxu_dtype), ((0, brefp - batch_ref), (0, 0)))],
        axis=0)
    nx, nref = bp // tile, brefp // tile
    total_tiles = nx + nref
    steps = (total_tiles + 1) // 2         # tiles per TensorCore shard

    # Pack all vector params (last-layer weight row + hidden biases) into one
    # array -> one DMA.  The final bias is not needed (it cancels).
    rows = [jnp.asarray(params[-1][0], jnp.float32).reshape(1, h_last)]
    rows += [jnp.asarray(params[i][1], jnp.float32).reshape(1, dims[i + 1])
             for i in range(n_hidden)]
    vpack = jnp.concatenate(
        [jnp.pad(r, ((0, 0), (0, maxlen - r.shape[1]))) for r in rows], axis=0)
    weights = [jnp.asarray(params[i][0], mxu_dtype) for i in range(n_hidden)]

    kernel = _make_kernel(dims, nx, tile, batch, batch_ref, total_tiles, steps,
                          mxu_dtype)

    flops = 2 * (bp + brefp) * sum(dims[i] * dims[i + 1]
                                   for i in range(num_linear))
    cost = pl.CostEstimate(
        flops=int(flops),
        transcendentals=int(brefp + 16),
        bytes_accessed=int((bp + brefp) * in_dim * itemsize + param_bytes
                           + 2 * 8 * 128 * 4))

    out_spec = pl.BlockSpec((1, 8, 128), lambda h, j: (h, 0, 0))
    data_index = lambda h, j: (jnp.minimum(h * steps + j, total_tiles - 1), 0)

    def build(use_pipeline_mode):
        def resident(shape):
            # Constant block index -> fetched once; single-buffer if supported.
            if use_pipeline_mode:
                return pl.BlockSpec(shape, lambda h, j: (0, 0),
                                    pipeline_mode=pl.Buffered(1))
            return pl.BlockSpec(shape, lambda h, j: (0, 0))

        if use_pipeline_mode and int(input_buffers) != 2:
            data_spec = pl.BlockSpec((tile, in_dim), data_index,
                                     pipeline_mode=pl.Buffered(int(input_buffers)))
        else:
            data_spec = pl.BlockSpec((tile, in_dim), data_index)

        return pl.pallas_call(
            kernel,
            out_shape=jax.ShapeDtypeStruct((2, 8, 128), jnp.float32),
            grid=(2, steps),
            in_specs=[data_spec] + [resident(w.shape) for w in weights]
                     + [resident(vpack.shape)],
            out_specs=out_spec,
            scratch_shapes=[pltpu.VMEM((1, 1), jnp.float32)] * 3,
            compiler_params=pltpu.CompilerParams(
                dimension_semantics=("parallel", "arbitrary"),
                vmem_limit_bytes=vmem_limit),
            cost_estimate=cost,
        )

    use_pm = hasattr(pl, "Buffered")
    try:
        parts = build(use_pm)(data, *weights, vpack)
    except Exception:
        if not use_pm:
            raise
        parts = build(False)(data, *weights, vpack)   # graceful fallback

    # Tiny cross-shard combine (mean sum + logsumexp merge) in plain JAX.
    s0, s1 = parts[0, 0, 0], parts[1, 0, 0]
    m0, m1 = parts[0, 1, 0], parts[1, 1, 0]
    l0, l1 = parts[0, 2, 0], parts[1, 2, 0]
    mean_f = (s0 + s1) / jnp.float32(batch)
    m_tot = jnp.maximum(m0, m1)
    l_tot = l0 * jnp.exp(m0 - m_tot) + l1 * jnp.exp(m1 - m_tot)
    log_mean_ef_ref = m_tot + jnp.log(l_tot) - jnp.float32(math.log(batch_ref))
    return (-(mean_f - log_mean_ef_ref)).reshape((1,))


def init_params(key, input_dim, hidden_layers):
    """Deterministic init mirroring nn.Linear's default (uniform +/- 1/sqrt(fan_in))."""
    dims = [input_dim] + list(hidden_layers) + [1]
    params = []
    for i in range(len(dims) - 1):
        fan_in, fan_out = dims[i], dims[i + 1]
        key, kw, kb = jax.random.split(key, 3)
        bound = 1.0 / math.sqrt(fan_in)
        w = jax.random.uniform(kw, (fan_in, fan_out), jnp.float32, -bound, bound)
        b = jax.random.uniform(kb, (1, fan_out), jnp.float32, -bound, bound)
        params.append((w, b))
    return params


def h_nee_ref(x, xref, params):
    """Pure-JAX reference of the PyTorch forward (ReLU activation)."""
    def net(v):
        h = v
        for i, (w, b) in enumerate(params):
            h = h @ w + b
            if i < len(params) - 1:
                h = jnp.maximum(h, 0.0)
        return h
    mean_f = jnp.mean(net(x))
    log_mean_ef_ref = jax.scipy.special.logsumexp(net(xref), axis=0) - jnp.log(
        jnp.float32(xref.shape[0]))
    return -(mean_f - log_mean_ef_ref)   # shape (1,)


if __name__ == "__main__":
    key = jax.random.PRNGKey(0)
    k = jax.random.split(key, 9)

    # Test 1: tiny shapes, one tile per stream (x padded 8 -> 16 rows).
    params1 = init_params(k[0], 16, [32, 32])
    x1 = jax.random.normal(k[1], (8, 16), jnp.float32)
    r1 = jax.random.normal(k[2], (16, 16), jnp.float32)
    out1 = jax.block_until_ready(h_nee_forward(x1, r1, params1))
    ref1 = jax.block_until_ready(h_nee_ref(x1, r1, params1))
    assert out1.shape == (1,), out1.shape
    assert jnp.allclose(out1, ref1, atol=1e-4, rtol=1e-4), (out1, ref1)

    # Test 2: ragged batches + several row tiles split across both grid shards
    # (exercises masking, the online LSE, and the cross-shard combine).
    params2 = init_params(k[3], 24, [48, 16])
    x2 = jax.random.normal(k[4], (20, 24), jnp.float32)
    r2 = jax.random.normal(k[5], (37, 24), jnp.float32)
    out2 = jax.block_until_ready(h_nee_forward(x2, r2, params2, max_tile_rows=8))
    ref2 = jax.block_until_ready(h_nee_ref(x2, r2, params2))
    assert jnp.allclose(out2, ref2, atol=1e-4, rtol=1e-4), (out2, ref2)

    # Test 3: odd tile count -> one padded no-op step on the second shard.
    params3 = init_params(k[6], 16, [32])
    x3 = jax.random.normal(k[7], (16, 16), jnp.float32)
    r3 = jax.random.normal(k[8], (24, 16), jnp.float32)
    out3 = jax.block_until_ready(h_nee_forward(x3, r3, params3, max_tile_rows=8))
    ref3 = jax.block_until_ready(h_nee_ref(x3, r3, params3))
    assert jnp.allclose(out3, ref3, atol=1e-4, rtol=1e-4), (out3, ref3)

    # Test 4: bf16 MXU path (native-dtype weights/activations), loose tolerance.
    out4 = jax.block_until_ready(
        h_nee_forward(x2, r2, params2, compute_dtype=jnp.bfloat16))
    assert jnp.allclose(out4, ref2, atol=1e-1, rtol=1e-1), (out4, ref2)

    print("KERNEL_OK")
</pallas_src>

<mosaic_0001>
module attributes {stable_mosaic.version = 11 : i64} {
  func.func @kernel(%arg0: i32, %arg1: i32, %arg2: memref<16x16xf32, #tpu.memory_space<vmem>>, %arg3: memref<16x32xf32, #tpu.memory_space<vmem>>, %arg4: memref<32x32xf32, #tpu.memory_space<vmem>>, %arg5: memref<3x128xf32, #tpu.memory_space<vmem>>, %arg6: memref<1x8x128xf32, #tpu.memory_space<vmem>>, %arg7: memref<1x1xf32, #tpu.memory_space<vmem>>, %arg8: memref<1x1xf32, #tpu.memory_space<vmem>>, %arg9: memref<1x1xf32, #tpu.memory_space<vmem>>) attributes {dimension_semantics = [#tpu.dimension_semantics<parallel>, #tpu.dimension_semantics<arbitrary>], iteration_bounds = array<i64: 2, 1>, scalar_prefetch = 0 : i64, scratch_operands = 3 : i64, tpu.core_type = #tpu.core_type<tc>, window_params = [{transform_indices = @transform_0, window_bounds = array<i64: 16, 16>}, {pipeline_mode = #tpu.pipeline_mode<synchronous>, transform_indices = @transform_1, window_bounds = array<i64: 16, 32>}, {pipeline_mode = #tpu.pipeline_mode<synchronous>, transform_indices = @transform_2, window_bounds = array<i64: 32, 32>}, {pipeline_mode = #tpu.pipeline_mode<synchronous>, transform_indices = @transform_3, window_bounds = array<i64: 3, 128>}, {transform_indices = @transform_4, window_bounds = array<i64: 1, 8, 128>}]} {
    %c0_i32 = arith.constant 0 : i32
    %0 = arith.cmpi eq, %arg1, %c0_i32 : i32
    %1 = arith.extui %0 : i1 to i32
    %c0_i32_0 = arith.constant 0 : i32
    %2 = arith.cmpi ne, %1, %c0_i32_0 : i32
    scf.if %2 {
      %cst_22 = arith.constant 0.000000e+00 : f32
      %47 = vector.broadcast %cst_22 : f32 to vector<1x1xf32>
      %c0_23 = arith.constant 0 : index
      %c0_24 = arith.constant 0 : index
      %48 = vector.load %arg7[%c0_23, %c0_24] : memref<1x1xf32, #tpu.memory_space<vmem>>, vector<1x1xf32>
      tpu.vector_store %arg7[%c0_23, %c0_24], %47 {strides = array<i32>} : memref<1x1xf32, #tpu.memory_space<vmem>>, vector<1x1xf32>,
      %cst_25 = arith.constant 0.000000e+00 : f32
      %49 = vector.broadcast %cst_25 : f32 to vector<1x1xf32>
      %c0_26 = arith.constant 0 : index
      %c0_27 = arith.constant 0 : index
      %50 = vector.load %arg9[%c0_26, %c0_27] : memref<1x1xf32, #tpu.memory_space<vmem>>, vector<1x1xf32>
      tpu.vector_store %arg9[%c0_26, %c0_27], %49 {strides = array<i32>} : memref<1x1xf32, #tpu.memory_space<vmem>>, vector<1x1xf32>,
      %cst_28 = arith.constant -1.000000e+30 : f32
      %51 = vector.broadcast %cst_28 : f32 to vector<1x1xf32>
      %c0_29 = arith.constant 0 : index
      %c0_30 = arith.constant 0 : index
      %52 = vector.load %arg8[%c0_29, %c0_30] : memref<1x1xf32, #tpu.memory_space<vmem>>, vector<1x1xf32>
      tpu.vector_store %arg8[%c0_29, %c0_30], %51 {strides = array<i32>} : memref<1x1xf32, #tpu.memory_space<vmem>>, vector<1x1xf32>,
    } else {
    }
    %c1_i32 = arith.constant 1 : i32
    %3 = arith.muli %arg0, %c1_i32 : i32
    %4 = arith.addi %3, %arg1 : i32
    %c2_i32 = arith.constant 2 : i32
    %5 = arith.cmpi slt, %4, %c2_i32 : i32
    %c1_i32_1 = arith.constant 1 : i32
    %6 = arith.minsi %4, %c1_i32_1 : i32
    %c1_i32_2 = arith.constant 1 : i32
    %7 = arith.cmpi slt, %6, %c1_i32_2 : i32
    %c0 = arith.constant 0 : index
    %c0_3 = arith.constant 0 : index
    %8 = vector.load %arg2[%c0, %c0_3] : memref<16x16xf32, #tpu.memory_space<vmem>>, vector<16x16xf32>
    %c0_4 = arith.constant 0 : index
    %c0_5 = arith.constant 0 : index
    %9 = vector.load %arg3[%c0_4, %c0_5] : memref<16x32xf32, #tpu.memory_space<vmem>>, vector<16x32xf32>
    %c1 = arith.constant 1 : index
    %c0_6 = arith.constant 0 : index
    %10 = vector.load %arg5[%c1, %c0_6] : memref<3x128xf32, #tpu.memory_space<vmem>>, vector<1x32xf32>
    %cst = arith.constant dense<0.000000e+00> : vector<16x32xf32>
    %11 = tpu.matmul %8, %9, %cst {dimension_numbers = #tpu.dot_dimension_numbers<[1], [0], [0], [1], [0, 0, 1, 1], [], []>} : vector<16x16xf32>, vector<16x32xf32>, vector<16x32xf32> -> vector<16x32xf32>
    %12 = vector.broadcast %10 : vector<1x32xf32> to vector<16x32xf32>
    %13 = arith.addf %11, %12 : vector<16x32xf32>
    %cst_7 = arith.constant 0.000000e+00 : f32
    %14 = vector.broadcast %cst_7 : f32 to vector<16x32xf32>
    %15 = arith.maximumf %13, %14 : vector<16x32xf32>
    %c0_8 = arith.constant 0 : index
    %c0_9 = arith.constant 0 : index
    %16 = vector.load %arg4[%c0_8, %c0_9] : memref<32x32xf32, #tpu.memory_space<vmem>>, vector<32x32xf32>
    %c2 = arith.constant 2 : index
    %c0_10 = arith.constant 0 : index
    %17 = vector.load %arg5[%c2, %c0_10] : memref<3x128xf32, #tpu.memory_space<vmem>>, vector<1x32xf32>
    %cst_11 = arith.constant dense<0.000000e+00> : vector<16x32xf32>
    %18 = tpu.matmul %15, %16, %cst_11 {dimension_numbers = #tpu.dot_dimension_numbers<[1], [0], [0], [1], [0, 0, 1, 1], [], []>} : vector<16x32xf32>, vector<32x32xf32>, vector<16x32xf32> -> vector<16x32xf32>
    %19 = vector.broadcast %17 : vector<1x32xf32> to vector<16x32xf32>
    %20 = arith.addf %18, %19 : vector<16x32xf32>
    %cst_12 = arith.constant 0.000000e+00 : f32
    %21 = vector.broadcast %cst_12 : f32 to vector<16x32xf32>
    %22 = arith.maximumf %20, %21 : vector<16x32xf32>
    %c0_13 = arith.constant 0 : index
    %c0_14 = arith.constant 0 : index
    %23 = vector.load %arg5[%c0_13, %c0_14] : memref<3x128xf32, #tpu.memory_space<vmem>>, vector<1x32xf32>
    %24 = vector.broadcast %23 : vector<1x32xf32> to vector<16x32xf32>
    %25 = arith.mulf %22, %24 : vector<16x32xf32>
    %cst_15 = arith.constant dense<0.000000e+00> : vector<16xf32>
    %26 = vector.multi_reduction <add>, %25, %cst_15 [1] : vector<16x32xf32> to vector<16xf32>
    %27 = vector.shape_cast %26 : vector<16xf32> to vector<16x1xf32>
    %c1_i32_16 = arith.constant 1 : i32
    %28 = arith.subi %6, %c1_i32_16 : i32
    %29 = arith.select %7, %6, %28 : i32
    %c16_i32 = arith.constant 16 : i32
    %30 = arith.muli %29, %c16_i32 : i32
    %31 = tpu.iota {dimensions = array<i32: 0>} : vector<16x1xi32>
    %32 = vector.broadcast %30 : i32 to vector<16x1xi32>
    %33 = arith.addi %32, %31 : vector<16x1xi32>
    %c8_i32 = arith.constant 8 : i32
    %c16_i32_17 = arith.constant 16 : i32
    %34 = arith.select %7, %c8_i32, %c16_i32_17 : i32
    %35 = vector.broadcast %34 : i32 to vector<16x1xi32>
    %36 = arith.cmpi slt, %33, %35 : vector<16x1xi32>
    %37 = vector.broadcast %5 : i1 to vector<16x1xi1>
    %38 = arith.andi %36, %37 : vector<16x1xi1>
    %39 = arith.extui %7 : i1 to i32
    %c0_i32_18 = arith.constant 0 : i32
    %40 = arith.cmpi ne, %39, %c0_i32_18 : i32
    scf.if %40 {
      %c0_22 = arith.constant 0 : index
      %c0_23 = arith.constant 0 : index
      %47 = vector.load %arg7[%c0_22, %c0_23] : memref<1x1xf32, #tpu.memory_space<vmem>>, vector<1x1xf32>
      %cst_24 = arith.constant 0.000000e+00 : f32
      %48 = vector.broadcast %cst_24 : f32 to vector<16x1xf32>
      %49 = arith.select %38, %27, %48 : vector<16x1xi1>, vector<16x1xf32>
      %cst_25 = arith.constant dense<0.000000e+00> : vector<1xf32>
      %50 = vector.multi_reduction <add>, %49, %cst_25 [0] : vector<16x1xf32> to vector<1xf32>
      %51 = vector.shape_cast %50 : vector<1xf32> to vector<1x1xf32>
      %52 = arith.addf %47, %51 : vector<1x1xf32>
      %c0_26 = arith.constant 0 : index
      %c0_27 = arith.constant 0 : index
      %53 = vector.load %arg7[%c0_26, %c0_27] : memref<1x1xf32, #tpu.memory_space<vmem>>, vector<1x1xf32>
      tpu.vector_store %arg7[%c0_26, %c0_27], %52 {strides = array<i32>} : memref<1x1xf32, #tpu.memory_space<vmem>>, vector<1x1xf32>,
    } else {
    }
    %true = arith.constant true
    %41 = arith.xori %7, %true : i1
    %42 = arith.extui %41 : i1 to i32
    %c0_i32_19 = arith.constant 0 : i32
    %43 = arith.cmpi ne, %42, %c0_i32_19 : i32
    scf.if %43 {
      %cst_22 = arith.constant 0xFF800000 : f32
      %47 = vector.broadcast %cst_22 : f32 to vector<16x1xf32>
      %48 = arith.select %38, %27, %47 : vector<16x1xi1>, vector<16x1xf32>
      %c0_23 = arith.constant 0 : index
      %c0_24 = arith.constant 0 : index
      %49 = vector.load %arg8[%c0_23, %c0_24] : memref<1x1xf32, #tpu.memory_space<vmem>>, vector<1x1xf32>
      %cst_25 = arith.constant dense<0xFF800000> : vector<1xf32>
      %50 = vector.multi_reduction <maximumf>, %48, %cst_25 [0] : vector<16x1xf32> to vector<1xf32>
      %51 = vector.shape_cast %50 : vector<1xf32> to vector<1x1xf32>
      %52 = arith.maximumf %49, %51 : vector<1x1xf32>
      %53 = arith.subf %49, %52 : vector<1x1xf32>
      %54 = math.exp %53 : vector<1x1xf32>
      %c0_26 = arith.constant 0 : index
      %c0_27 = arith.constant 0 : index
      %55 = vector.load %arg9[%c0_26, %c0_27] : memref<1x1xf32, #tpu.memory_space<vmem>>, vector<1x1xf32>
      %56 = arith.mulf %54, %55 : vector<1x1xf32>
      %57 = vector.broadcast %52 : vector<1x1xf32> to vector<16x1xf32>
      %58 = arith.subf %48, %57 : vector<16x1xf32>
      %59 = math.exp %58 : vector<16x1xf32>
      %cst_28 = arith.constant dense<0.000000e+00> : vector<1xf32>
      %60 = vector.multi_reduction <add>, %59, %cst_28 [0] : vector<16x1xf32> to vector<1xf32>
      %61 = vector.shape_cast %60 : vector<1xf32> to vector<1x1xf32>
      %62 = arith.addf %56, %61 : vector<1x1xf32>
      %c0_29 = arith.constant 0 : index
      %c0_30 = arith.constant 0 : index
      %63 = vector.load %arg9[%c0_29, %c0_30] : memref<1x1xf32, #tpu.memory_space<vmem>>, vector<1x1xf32>
      tpu.vector_store %arg9[%c0_29, %c0_30], %62 {strides = array<i32>} : memref<1x1xf32, #tpu.memory_space<vmem>>, vector<1x1xf32>,
      %c0_31 = arith.constant 0 : index
      %c0_32 = arith.constant 0 : index
      %64 = vector.load %arg8[%c0_31, %c0_32] : memref<1x1xf32, #tpu.memory_space<vmem>>, vector<1x1xf32>
      tpu.vector_store %arg8[%c0_31, %c0_32], %52 {strides = array<i32>} : memref<1x1xf32, #tpu.memory_space<vmem>>, vector<1x1xf32>,
    } else {
    }
    %c0_i32_20 = arith.constant 0 : i32
    %44 = arith.cmpi eq, %arg1, %c0_i32_20 : i32
    %45 = arith.extui %44 : i1 to i32
    %c0_i32_21 = arith.constant 0 : i32
    %46 = arith.cmpi ne, %45, %c0_i32_21 : i32
    scf.if %46 {
      %47 = tpu.iota {dimensions = array<i32: 1>} : vector<1x8x128xi32>
      %c0_i32_22 = arith.constant 0 : i32
      %48 = vector.broadcast %c0_i32_22 : i32 to vector<1x8x128xi32>
      %49 = arith.cmpi eq, %47, %48 : vector<1x8x128xi32>
      %c0_23 = arith.constant 0 : index
      %c0_24 = arith.constant 0 : index
      %50 = vector.load %arg7[%c0_23, %c0_24] : memref<1x1xf32, #tpu.memory_space<vmem>>, vector<1x1xf32>
      %cst_25 = arith.constant 0.000000e+00 : f32
      %51 = vector.shape_cast %50 : vector<1x1xf32> to vector<1x1x1xf32>
      %52 = vector.broadcast %51 : vector<1x1x1xf32> to vector<1x8x128xf32>
      %53 = vector.broadcast %cst_25 : f32 to vector<1x8x128xf32>
      %54 = arith.select %49, %52, %53 : vector<1x8x128xi1>, vector<1x8x128xf32>
      %c1_i32_26 = arith.constant 1 : i32
      %55 = vector.broadcast %c1_i32_26 : i32 to vector<1x8x128xi32>
      %56 = arith.cmpi eq, %47, %55 : vector<1x8x128xi32>
      %c0_27 = arith.constant 0 : index
      %c0_28 = arith.constant 0 : index
      %57 = vector.load %arg8[%c0_27, %c0_28] : memref<1x1xf32, #tpu.memory_space<vmem>>, vector<1x1xf32>
      %cst_29 = arith.constant 0.000000e+00 : f32
      %58 = vector.shape_cast %57 : vector<1x1xf32> to vector<1x1x1xf32>
      %59 = vector.broadcast %58 : vector<1x1x1xf32> to vector<1x8x128xf32>
      %60 = vector.broadcast %cst_29 : f32 to vector<1x8x128xf32>
      %61 = arith.select %56, %59, %60 : vector<1x8x128xi1>, vector<1x8x128xf32>
      %62 = arith.addf %54, %61 : vector<1x8x128xf32>
      %c2_i32_30 = arith.constant 2 : i32
      %63 = vector.broadcast %c2_i32_30 : i32 to vector<1x8x128xi32>
      %64 = arith.cmpi eq, %47, %63 : vector<1x8x128xi32>
      %c0_31 = arith.constant 0 : index
      %c0_32 = arith.constant 0 : index
      %65 = vector.load %arg9[%c0_31, %c0_32] : memref<1x1xf32, #tpu.memory_space<vmem>>, vector<1x1xf32>
      %cst_33 = arith.constant 0.000000e+00 : f32
      %66 = vector.shape_cast %65 : vector<1x1xf32> to vector<1x1x1xf32>
      %67 = vector.broadcast %66 : vector<1x1x1xf32> to vector<1x8x128xf32>
      %68 = vector.broadcast %cst_33 : f32 to vector<1x8x128xf32>
      %69 = arith.select %64, %67, %68 : vector<1x8x128xi1>, vector<1x8x128xf32>
      %70 = arith.addf %62, %69 : vector<1x8x128xf32>
      %c0_34 = arith.constant 0 : index
      %c0_35 = arith.constant 0 : index
      %c0_36 = arith.constant 0 : index
      %71 = vector.load %arg6[%c0_34, %c0_35, %c0_36] : memref<1x8x128xf32, #tpu.memory_space<vmem>>, vector<1x8x128xf32>
      tpu.vector_store %arg6[%c0_34, %c0_35, %c0_36], %70 {strides = array<i32>} : memref<1x8x128xf32, #tpu.memory_space<vmem>>, vector<1x8x128xf32>,
    } else {
    }
    return
  }
  func.func @transform_0(%arg0: i32, %arg1: i32) -> (i32, i32) {
    %c1_i32 = arith.constant 1 : i32
    %0 = arith.muli %arg0, %c1_i32 : i32
    %1 = arith.addi %0, %arg1 : i32
    %c1_i32_0 = arith.constant 1 : i32
    %2 = arith.minsi %1, %c1_i32_0 : i32
    %c0_i32 = arith.constant 0 : i32
    %c0_i32_1 = arith.constant 0 : i32
    return %2, %c0_i32 : i32, i32
  }
  func.func @transform_1(%arg0: i32, %arg1: i32) -> (i32, i32) {
    %c0_i32 = arith.constant 0 : i32
    %c0_i32_0 = arith.constant 0 : i32
    %c0_i32_1 = arith.constant 0 : i32
    return %c0_i32, %c0_i32_0 : i32, i32
  }
  func.func @transform_2(%arg0: i32, %arg1: i32) -> (i32, i32) {
    %c0_i32 = arith.constant 0 : i32
    %c0_i32_0 = arith.constant 0 : i32
    %c0_i32_1 = arith.constant 0 : i32
    return %c0_i32, %c0_i32_0 : i32, i32
  }
  func.func @transform_3(%arg0: i32, %arg1: i32) -> (i32, i32) {
    %c0_i32 = arith.constant 0 : i32
    %c0_i32_0 = arith.constant 0 : i32
    %c0_i32_1 = arith.constant 0 : i32
    return %c0_i32, %c0_i32_0 : i32, i32
  }
  func.func @transform_4(%arg0: i32, %arg1: i32) -> (i32, i32, i32) {
    %c0_i32 = arith.constant 0 : i32
    %c0_i32_0 = arith.constant 0 : i32
    %c0_i32_1 = arith.constant 0 : i32
    return %arg0, %c0_i32, %c0_i32_0 : i32, i32, i32
  }
}

module attributes {stable_mosaic.version = 11 : i64} {
  func.func @kernel(%arg0: i32, %arg1: i32, %arg2: memref<16x16xf32, #tpu.memory_space<vmem>>, %arg3: memref<16x32xf32, #tpu.memory_space<vmem>>, %arg4: memref<32x32xf32, #tpu.memory_space<vmem>>, %arg5: memref<3x128xf32, #tpu.memory_space<vmem>>, %arg6: memref<1x8x128xf32, #tpu.memory_space<vmem>>, %arg7: memref<1x1xf32, #tpu.memory_space<vmem>>, %arg8: memref<1x1xf32, #tpu.memory_space<vmem>>, %arg9: memref<1x1xf32, #tpu.memory_space<vmem>>) attributes {dimension_semantics = [#tpu.dimension_semantics<parallel>, #tpu.dimension_semantics<arbitrary>], iteration_bounds = array<i64: 2, 1>, scalar_prefetch = 0 : i64, scratch_operands = 3 : i64, tpu.core_type = #tpu.core_type<tc>, window_params = [{transform_indices = @transform_0, window_bounds = array<i64: 16, 16>}, {pipeline_mode = #tpu.pipeline_mode<synchronous>, transform_indices = @transform_1, window_bounds = array<i64: 16, 32>}, {pipeline_mode = #tpu.pipeline_mode<synchronous>, transform_indices = @transform_2, window_bounds = array<i64: 32, 32>}, {pipeline_mode = #tpu.pipeline_mode<synchronous>, transform_indices = @transform_3, window_bounds = array<i64: 3, 128>}, {transform_indices = @transform_4, window_bounds = array<i64: 1, 8, 128>}]} {
    %c0_i32 = arith.constant 0 : i32
    %0 = arith.cmpi eq, %arg1, %c0_i32 : i32
    %1 = arith.extui %0 : i1 to i32
    %c0_i32_0 = arith.constant 0 : i32
    %2 = arith.cmpi ne, %1, %c0_i32_0 : i32
    scf.if %2 {
      %cst_22 = arith.constant 0.000000e+00 : f32
      %47 = vector.broadcast %cst_22 : f32 to vector<1x1xf32>
      %c0_23 = arith.constant 0 : index
      %c0_24 = arith.constant 0 : index
      %48 = vector.load %arg7[%c0_23, %c0_24] : memref<1x1xf32, #tpu.memory_space<vmem>>, vector<1x1xf32>
      tpu.vector_store %arg7[%c0_23, %c0_24], %47 {strides = array<i32>} : memref<1x1xf32, #tpu.memory_space<vmem>>, vector<1x1xf32>,
      %cst_25 = arith.constant 0.000000e+00 : f32
      %49 = vector.broadcast %cst_25 : f32 to vector<1x1xf32>
      %c0_26 = arith.constant 0 : index
      %c0_27 = arith.constant 0 : index
      %50 = vector.load %arg9[%c0_26, %c0_27] : memref<1x1xf32, #tpu.memory_space<vmem>>, vector<1x1xf32>
      tpu.vector_store %arg9[%c0_26, %c0_27], %49 {strides = array<i32>} : memref<1x1xf32, #tpu.memory_space<vmem>>, vector<1x1xf32>,
      %cst_28 = arith.constant -1.000000e+30 : f32
      %51 = vector.broadcast %cst_28 : f32 to vector<1x1xf32>
      %c0_29 = arith.constant 0 : index
      %c0_30 = arith.constant 0 : index
      %52 = vector.load %arg8[%c0_29, %c0_30] : memref<1x1xf32, #tpu.memory_space<vmem>>, vector<1x1xf32>
      tpu.vector_store %arg8[%c0_29, %c0_30], %51 {strides = array<i32>} : memref<1x1xf32, #tpu.memory_space<vmem>>, vector<1x1xf32>,
    } else {
    }
    %c1_i32 = arith.constant 1 : i32
    %3 = arith.muli %arg0, %c1_i32 : i32
    %4 = arith.addi %3, %arg1 : i32
    %c2_i32 = arith.constant 2 : i32
    %5 = arith.cmpi slt, %4, %c2_i32 : i32
    %c1_i32_1 = arith.constant 1 : i32
    %6 = arith.minsi %4, %c1_i32_1 : i32
    %c1_i32_2 = arith.constant 1 : i32
    %7 = arith.cmpi slt, %6, %c1_i32_2 : i32
    %c0 = arith.constant 0 : index
    %c0_3 = arith.constant 0 : index
    %8 = vector.load %arg2[%c0, %c0_3] : memref<16x16xf32, #tpu.memory_space<vmem>>, vector<16x16xf32>
    %c0_4 = arith.constant 0 : index
    %c0_5 = arith.constant 0 : index
    %9 = vector.load %arg3[%c0_4, %c0_5] : memref<16x32xf32, #tpu.memory_space<vmem>>, vector<16x32xf32>
    %c1 = arith.constant 1 : index
    %c0_6 = arith.constant 0 : index
    %10 = vector.load %arg5[%c1, %c0_6] : memref<3x128xf32, #tpu.memory_space<vmem>>, vector<1x32xf32>
    %cst = arith.constant dense<0.000000e+00> : vector<16x32xf32>
    %11 = tpu.matmul %8, %9, %cst {dimension_numbers = #tpu.dot_dimension_numbers<[1], [0], [0], [1], [0, 0, 1, 1], [], []>} : vector<16x16xf32>, vector<16x32xf32>, vector<16x32xf32> -> vector<16x32xf32>
    %12 = vector.broadcast %10 : vector<1x32xf32> to vector<16x32xf32>
    %13 = arith.addf %11, %12 : vector<16x32xf32>
    %cst_7 = arith.constant 0.000000e+00 : f32
    %14 = vector.broadcast %cst_7 : f32 to vector<16x32xf32>
    %15 = arith.maximumf %13, %14 : vector<16x32xf32>
    %c0_8 = arith.constant 0 : index
    %c0_9 = arith.constant 0 : index
    %16 = vector.load %arg4[%c0_8, %c0_9] : memref<32x32xf32, #tpu.memory_space<vmem>>, vector<32x32xf32>
    %c2 = arith.constant 2 : index
    %c0_10 = arith.constant 0 : index
    %17 = vector.load %arg5[%c2, %c0_10] : memref<3x128xf32, #tpu.memory_space<vmem>>, vector<1x32xf32>
    %cst_11 = arith.constant dense<0.000000e+00> : vector<16x32xf32>
    %18 = tpu.matmul %15, %16, %cst_11 {dimension_numbers = #tpu.dot_dimension_numbers<[1], [0], [0], [1], [0, 0, 1, 1], [], []>} : vector<16x32xf32>, vector<32x32xf32>, vector<16x32xf32> -> vector<16x32xf32>
    %19 = vector.broadcast %17 : vector<1x32xf32> to vector<16x32xf32>
    %20 = arith.addf %18, %19 : vector<16x32xf32>
    %cst_12 = arith.constant 0.000000e+00 : f32
    %21 = vector.broadcast %cst_12 : f32 to vector<16x32xf32>
    %22 = arith.maximumf %20, %21 : vector<16x32xf32>
    %c0_13 = arith.constant 0 : index
    %c0_14 = arith.constant 0 : index
    %23 = vector.load %arg5[%c0_13, %c0_14] : memref<3x128xf32, #tpu.memory_space<vmem>>, vector<1x32xf32>
    %24 = vector.broadcast %23 : vector<1x32xf32> to vector<16x32xf32>
    %25 = arith.mulf %22, %24 : vector<16x32xf32>
    %cst_15 = arith.constant dense<0.000000e+00> : vector<16xf32>
    %26 = vector.multi_reduction <add>, %25, %cst_15 [1] : vector<16x32xf32> to vector<16xf32>
    %27 = vector.shape_cast %26 : vector<16xf32> to vector<16x1xf32>
    %c1_i32_16 = arith.constant 1 : i32
    %28 = arith.subi %6, %c1_i32_16 : i32
    %29 = arith.select %7, %6, %28 : i32
    %c16_i32 = arith.constant 16 : i32
    %30 = arith.muli %29, %c16_i32 : i32
    %31 = tpu.iota {dimensions = array<i32: 0>} : vector<16x1xi32>
    %32 = vector.broadcast %30 : i32 to vector<16x1xi32>
    %33 = arith.addi %32, %31 : vector<16x1xi32>
    %c8_i32 = arith.constant 8 : i32
    %c16_i32_17 = arith.constant 16 : i32
    %34 = arith.select %7, %c8_i32, %c16_i32_17 : i32
    %35 = vector.broadcast %34 : i32 to vector<16x1xi32>
    %36 = arith.cmpi slt, %33, %35 : vector<16x1xi32>
    %37 = vector.broadcast %5 : i1 to vector<16x1xi1>
    %38 = arith.andi %36, %37 : vector<16x1xi1>
    %39 = arith.extui %7 : i1 to i32
    %c0_i32_18 = arith.constant 0 : i32
    %40 = arith.cmpi ne, %39, %c0_i32_18 : i32
    scf.if %40 {
      %c0_22 = arith.constant 0 : index
      %c0_23 = arith.constant 0 : index
      %47 = vector.load %arg7[%c0_22, %c0_23] : memref<1x1xf32, #tpu.memory_space<vmem>>, vector<1x1xf32>
      %cst_24 = arith.constant 0.000000e+00 : f32
      %48 = vector.broadcast %cst_24 : f32 to vector<16x1xf32>
      %49 = arith.select %38, %27, %48 : vector<16x1xi1>, vector<16x1xf32>
      %cst_25 = arith.constant dense<0.000000e+00> : vector<1xf32>
      %50 = vector.multi_reduction <add>, %49, %cst_25 [0] : vector<16x1xf32> to vector<1xf32>
      %51 = vector.shape_cast %50 : vector<1xf32> to vector<1x1xf32>
      %52 = arith.addf %47, %51 : vector<1x1xf32>
      %c0_26 = arith.constant 0 : index
      %c0_27 = arith.constant 0 : index
      %53 = vector.load %arg7[%c0_26, %c0_27] : memref<1x1xf32, #tpu.memory_space<vmem>>, vector<1x1xf32>
      tpu.vector_store %arg7[%c0_26, %c0_27], %52 {strides = array<i32>} : memref<1x1xf32, #tpu.memory_space<vmem>>, vector<1x1xf32>,
    } else {
    }
    %true = arith.constant true
    %41 = arith.xori %7, %true : i1
    %42 = arith.extui %41 : i1 to i32
    %c0_i32_19 = arith.constant 0 : i32
    %43 = arith.cmpi ne, %42, %c0_i32_19 : i32
    scf.if %43 {
      %cst_22 = arith.constant 0xFF800000 : f32
      %47 = vector.broadcast %cst_22 : f32 to vector<16x1xf32>
      %48 = arith.select %38, %27, %47 : vector<16x1xi1>, vector<16x1xf32>
      %c0_23 = arith.constant 0 : index
      %c0_24 = arith.constant 0 : index
      %49 = vector.load %arg8[%c0_23, %c0_24] : memref<1x1xf32, #tpu.memory_space<vmem>>, vector<1x1xf32>
      %cst_25 = arith.constant dense<0xFF800000> : vector<1xf32>
      %50 = vector.multi_reduction <maximumf>, %48, %cst_25 [0] : vector<16x1xf32> to vector<1xf32>
      %51 = vector.shape_cast %50 : vector<1xf32> to vector<1x1xf32>
      %52 = arith.maximumf %49, %51 : vector<1x1xf32>
      %53 = arith.subf %49, %52 : vector<1x1xf32>
      %54 = math.exp %53 : vector<1x1xf32>
      %c0_26 = arith.constant 0 : index
      %c0_27 = arith.constant 0 : index
      %55 = vector.load %arg9[%c0_26, %c0_27] : memref<1x1xf32, #tpu.memory_space<vmem>>, vector<1x1xf32>
      %56 = arith.mulf %54, %55 : vector<1x1xf32>
      %57 = vector.broadcast %52 : vector<1x1xf32> to vector<16x1xf32>
      %58 = arith.subf %48, %57 : vector<16x1xf32>
      %59 = math.exp %58 : vector<16x1xf32>
      %cst_28 = arith.constant dense<0.000000e+00> : vector<1xf32>
      %60 = vector.multi_reduction <add>, %59, %cst_28 [0] : vector<16x1xf32> to vector<1xf32>
      %61 = vector.shape_cast %60 : vector<1xf32> to vector<1x1xf32>
      %62 = arith.addf %56, %61 : vector<1x1xf32>
      %c0_29 = arith.constant 0 : index
      %c0_30 = arith.constant 0 : index
      %63 = vector.load %arg9[%c0_29, %c0_30] : memref<1x1xf32, #tpu.memory_space<vmem>>, vector<1x1xf32>
      tpu.vector_store %arg9[%c0_29, %c0_30], %62 {strides = array<i32>} : memref<1x1xf32, #tpu.memory_space<vmem>>, vector<1x1xf32>,
      %c0_31 = arith.constant 0 : index
      %c0_32 = arith.constant 0 : index
      %64 = vector.load %arg8[%c0_31, %c0_32] : memref<1x1xf32, #tpu.memory_space<vmem>>, vector<1x1xf32>
      tpu.vector_store %arg8[%c0_31, %c0_32], %52 {strides = array<i32>} : memref<1x1xf32, #tpu.memory_space<vmem>>, vector<1x1xf32>,
    } else {
    }
    %c0_i32_20 = arith.constant 0 : i32
    %44 = arith.cmpi eq, %arg1, %c0_i32_20 : i32
    %45 = arith.extui %44 : i1 to i32
    %c0_i32_21 = arith.constant 0 : i32
    %46 = arith.cmpi ne, %45, %c0_i32_21 : i32
    scf.if %46 {
      %47 = tpu.iota {dimensions = array<i32: 1>} : vector<1x8x128xi32>
      %c0_i32_22 = arith.constant 0 : i32
      %48 = vector.broadcast %c0_i32_22 : i32 to vector<1x8x128xi32>
      %49 = arith.cmpi eq, %47, %48 : vector<1x8x128xi32>
      %c0_23 = arith.constant 0 : index
      %c0_24 = arith.constant 0 : index
      %50 = vector.load %arg7[%c0_23, %c0_24] : memref<1x1xf32, #tpu.memory_space<vmem>>, vector<1x1xf32>
      %cst_25 = arith.constant 0.000000e+00 : f32
      %51 = vector.shape_cast %50 : vector<1x1xf32> to vector<1x1x1xf32>
      %52 = vector.broadcast %51 : vector<1x1x1xf32> to vector<1x8x128xf32>
      %53 = vector.broadcast %cst_25 : f32 to vector<1x8x128xf32>
      %54 = arith.select %49, %52, %53 : vector<1x8x128xi1>, vector<1x8x128xf32>
      %c1_i32_26 = arith.constant 1 : i32
      %55 = vector.broadcast %c1_i32_26 : i32 to vector<1x8x128xi32>
      %56 = arith.cmpi eq, %47, %55 : vector<1x8x128xi32>
      %c0_27 = arith.constant 0 : index
      %c0_28 = arith.constant 0 : index
      %57 = vector.load %arg8[%c0_27, %c0_28] : memref<1x1xf32, #tpu.memory_space<vmem>>, vector<1x1xf32>
      %cst_29 = arith.constant 0.000000e+00 : f32
      %58 = vector.shape_cast %57 : vector<1x1xf32> to vector<1x1x1xf32>
      %59 = vector.broadcast %58 : vector<1x1x1xf32> to vector<1x8x128xf32>
      %60 = vector.broadcast %cst_29 : f32 to vector<1x8x128xf32>
      %61 = arith.select %56, %59, %60 : vector<1x8x128xi1>, vector<1x8x128xf32>
      %62 = arith.addf %54, %61 : vector<1x8x128xf32>
      %c2_i32_30 = arith.constant 2 : i32
      %63 = vector.broadcast %c2_i32_30 : i32 to vector<1x8x128xi32>
      %64 = arith.cmpi eq, %47, %63 : vector<1x8x128xi32>
      %c0_31 = arith.constant 0 : index
      %c0_32 = arith.constant 0 : index
      %65 = vector.load %arg9[%c0_31, %c0_32] : memref<1x1xf32, #tpu.memory_space<vmem>>, vector<1x1xf32>
      %cst_33 = arith.constant 0.000000e+00 : f32
      %66 = vector.shape_cast %65 : vector<1x1xf32> to vector<1x1x1xf32>
      %67 = vector.broadcast %66 : vector<1x1x1xf32> to vector<1x8x128xf32>
      %68 = vector.broadcast %cst_33 : f32 to vector<1x8x128xf32>
      %69 = arith.select %64, %67, %68 : vector<1x8x128xi1>, vector<1x8x128xf32>
      %70 = arith.addf %62, %69 : vector<1x8x128xf32>
      %c0_34 = arith.constant 0 : index
      %c0_35 = arith.constant 0 : index
      %c0_36 = arith.constant 0 : index
      %71 = vector.load %arg6[%c0_34, %c0_35, %c0_36] : memref<1x8x128xf32, #tpu.memory_space<vmem>>, vector<1x8x128xf32>
      tpu.vector_store %arg6[%c0_34, %c0_35, %c0_36], %70 {strides = array<i32>} : memref<1x8x128xf32, #tpu.memory_space<vmem>>, vector<1x8x128xf32>,
    } else {
    }
    return
  }
  func.func @transform_0(%arg0: i32, %arg1: i32) -> (i32, i32) {
    %c1_i32 = arith.constant 1 : i32
    %0 = arith.muli %arg0, %c1_i32 : i32
    %1 = arith.addi %0, %arg1 : i32
    %c1_i32_0 = arith.constant 1 : i32
    %2 = arith.minsi %1, %c1_i32_0 : i32
    %c0_i32 = arith.constant 0 : i32
    %c0_i32_1 = arith.constant 0 : i32
    return %2, %c0_i32 : i32, i32
  }
  func.func @transform_1(%arg0: i32, %arg1: i32) -> (i32, i32) {
    %c0_i32 = arith.constant 0 : i32
    %c0_i32_0 = arith.constant 0 : i32
    %c0_i32_1 = arith.constant 0 : i32
    return %c0_i32, %c0_i32_0 : i32, i32
  }
  func.func @transform_2(%arg0: i32, %arg1: i32) -> (i32, i32) {
    %c0_i32 = arith.constant 0 : i32
    %c0_i32_0 = arith.constant 0 : i32
    %c0_i32_1 = arith.constant 0 : i32
    return %c0_i32, %c0_i32_0 : i32, i32
  }
  func.func @transform_3(%arg0: i32, %arg1: i32) -> (i32, i32) {
    %c0_i32 = arith.constant 0 : i32
    %c0_i32_0 = arith.constant 0 : i32
    %c0_i32_1 = arith.constant 0 : i32
    return %c0_i32, %c0_i32_0 : i32, i32
  }
  func.func @transform_4(%arg0: i32, %arg1: i32) -> (i32, i32, i32) {
    %c0_i32 = arith.constant 0 : i32
    %c0_i32_0 = arith.constant 0 : i32
    %c0_i32_1 = arith.constant 0 : i32
    return %arg0, %c0_i32, %c0_i32_0 : i32, i32, i32
  }
}

</mosaic_0001>

<bundles_post_ra>
// kernel: tpu_custom_call.1
= control target key start
LH: loop header
LB: loop body
LE: loop exit
PB: predicated region body
PF: predicated region fallthrough
CT: control target
= control target key end

     0   :  { %9 = vsyncpa [#allocation6], 0  ;;  %s1087_s0 = inlined_call_operand.vmem [shape: f32[32,16], index: 0, kind: input, shape index: {}]   ;;  %s1088_s1 = inlined_call_operand.vmem [shape: f32[16,32], index: 1, kind: input, shape index: {}]   ;;  %s1089_s2 = inlined_call_operand.vmem [shape: f32[32,32], index: 2, kind: input, shape index: {}]   ;;  %s1090_s3 = inlined_call_operand.vmem [shape: f32[3,128], index: 3, kind: input, shape index: {}]   ;;  %s1091_s4 = inlined_call_operand.hbm [shape: f32[2,8,128], index: 4, kind: output, shape index: {}]  }
   0x1   :  { %11 = vsyncpa [#allocation6 + $0x1], 0  ;;  %s880_s15 = smov 0   ;;  %s882_s16 = smov 0  }
   0x2   :  { %s884_s17 = smov 0   ;;  %s886_s18 = smov 0  }
   0x3   :  { %s888_s19 = smov 0   ;;  %s890_s20 = smov 0  }
   0x4 LB: > { %s646_s21 = sadd.s32 4294967295, %s849_s20   ;;  %s647_s22 = sadd.s32 4294967294, %s849_s20   ;;  %s849_s20 = sphi %s890_s20, %s17_s20   ;;  %s845_s19 = sphi %s888_s19, %s1104_s19   ;;  %s841_s18 = sphi %s886_s18, %s1103_s18   ;;  %s837_s17 = sphi %s884_s17, %s1102_s17   ;;  %s833_s16 = sphi %s882_s16, %s1101_s16   ;;  %s829_s15 = sphi %s880_s15, %s1100_s15  }
   0x5   : > { %s29_s23 = sadd.s32 1, %s845_s19  ;;  %s131_s24 = sadd.s32 1, %s837_s17 }
   0x6   : > { %p31_p0 = scmp.ge.s32.totalorder %s29_s23, 2  ;;  %p141_p1 = scmp.ne.s32.totalorder %s837_s17, %s833_s16 }
   0x7   : > { %p142_p2 = scmp.eq.s32.totalorder %s646_s21, 1  ;;  %p147_p3 = scmp.ne.s32.totalorder %s833_s16, %s829_s15 }
   0x8   : > { %s1106_s23 = smov (%p31_p0, %s29_s23), 0  ;;  %p148_p5 = scmp.eq.s32.totalorder %s647_s22, 1 }
   0x9   : > { %p920_p4 = por %p142_p2, %p141_p1  ;;  %s128_s26 = ssub.s32 %s845_s19, %s1106_s23 }
   0xa   : > { %p650_p6 = scmp.ge.s32.totalorder %s849_s20, 1  ;;  %p129_p7 = scmp.eq.s32.totalorder %s128_s26, 0 }
   0xb   : > { %p927_p8 = por %p148_p5, %p147_p3  ;;  %p190_p9 = scmp.lt.s32.totalorder %s849_s20, 3 }
   0xc   : > { %s933_s28 = scalar_select %p129_p7, %s837_s17, %s131_s24  }
   0xd   : > { %p191_p10 = pnand %p650_p6, %p190_p9 }
   0xe   : > { %s216_s29 = sand.u32 (!%p191_p10), 1, %s833_s16   ;;  %p220_p11 = scmp.lt.s32.totalorder (!%p191_p10), %s841_s18, 1 }
   0xf   : > { %194 = sbr.rel (%p191_p10) target bundleno = 798 (0x31e), region = 36  ;;  %s941_s6 = sshll.u32 (!%p191_p10), %s216_s29, 3 }
  0x10   : > { %p240_p13 = scmp.lt.s32.totalorder (!%p191_p10), %s841_s18, 2  ;;  %s218_s30 = scalar_lea.vmem (!%p191_p10), [#allocation5], %s941_s6 }
  0x14   : > { %vm235_vm0 = vcmask 0   ;;  %v247_v0 = vld [vmem:[%s1088_s1 + $0x8] sm:$0xff]  ;;  %v446_v1 = vlaneseq  ;;  %v851_v2 = vmov 0.0   ;;  %v852_v3 = vmov -1e+30   ;;  %v246_v4 = vld [vmem:[%s1088_s1] sm:$0xff] }
  0x15   : > { %236 = vst.msk [vmem:[#allocation2] sm:$0x1] %vm235_vm0, %v851_v2  ;;  %237 = vst.msk [vmem:[#allocation4] sm:$0x1] %vm235_vm0, %v851_v2  ;;  %689 = vmatprep.subr.mxu0 %v247_v0  ;;  %s221_s9 = scalar_select %p220_p11, %s841_s18, 1  ;;  %vm253_vm1 = vcmask 130048  }
  0x16   : > { %238 = vst.msk [vmem:[#allocation3] sm:$0x1] %vm235_vm0, %v852_v3  ;;  %690 = vmatpush3.msra.mxu0 %v247_v0  ;;  %v953_v5 = vshrl.u32 %v446_v1, 7  ;;  %s452_s10 = scalar_select %p220_p11, 8, 16  ;;  %v340_v17 = vld [vmem:[%s1089_s2 + $0x18] sm:$0xff] }
  0x17   : > { %691 = vmatprep.subr.mxu0 %v246_v4  ;;  %s652_s11 = sshll.u32 %s221_s9, 1  ;;  %s664_s12 = sadd.s32 4294967295, %s221_s9  ;;  %696 = vmatprep.subr.mxu1 %v340_v17  ;;  %v339_v18 = vld [vmem:[%s1089_s2 + $0x10] sm:$0xff]  ;;  %v338_v19 = vld [vmem:[%s1089_s2 + $0x8] sm:$0xff]  ;;  %v337_v20 = vld [vmem:[%s1089_s2] sm:$0xff]  ;;  %vm346_vm7 = vcmask 261120  }
  0x18   : > { %692 = vmatpush3.msra.mxu0 %v246_v4  ;;  %p223_p12 = scmp.lt.s32.totalorder %s652_s11, 3  ;;  %s1108_s9 = smov (!%p220_p11, %s221_s9), %s664_s12  ;;  %v448_v6 = vadd.s32 8, %v953_v5  ;;  %v453_v8 = vstv %s452_s10  ;;  %697 = vmatpush3.msra.mxu1 %v340_v17  ;;  %v657_v21 = vld [vmem:[%s1090_s3 + $0x1] ss:$0 sm:$0xff]  ;;  %v660_v28 = vld [vmem:[%s1090_s3 + $0x2] ss:$0 sm:$0xff] }
  0x19   : > { %s665_s13 = sshll.u32 %s1108_s9, 4  ;;  %698 = vmatprep.subr.mxu1 %v339_v18  ;;  %v663_v35 = vld [vmem:[%s1090_s3] ss:$0 sm:$0xff] }
  0x1a   : > { %s1110_s11 = smov (!%p223_p12, %s652_s11), 3  ;;  %v449_v7 = vstv %s665_s13  ;;  %699 = vmatpush3.msra.mxu1 %v339_v18 }
  0x1b   : > { %s653_s14 = sshll.u32 %s1110_s11, 3  ;;  %v450_v9 = vadd.s32 %v449_v7, %v953_v5  ;;  %v451_v10 = vadd.s32 %v449_v7, %v448_v6  ;;  %700 = vmatprep.subr.mxu1 %v338_v19 }
  0x1c   : > { %s226_s24 = scalar_lea.vmem %s1087_s0, %s653_s14  ;;  %701 = vmatpush3.msra.mxu1 %v338_v19  ;;  %v464_v50 = vld [vmem:[#allocation2] sm:$0x1] (%p220_p11) }
  0x1d   : > { %v244_v11 = vld [vmem:[%s226_s24] sm:$0xff]  ;;  %v245_v12 = vld [vmem:[%s226_s24 + $0x8] sm:$0xff]  ;;  %s456_s26 = scalar_select %p240_p13, 1, 0  ;;  %vm967_vm2 = vcmp.lt.s32.totalorder %v450_v9, %v453_v8  ;;  %vm971_vm3 = vcmp.lt.s32.totalorder %v451_v10, %v453_v8  ;;  %702 = vmatprep.subr.mxu1 %v337_v20 }
  0x1e   : > { %693 = vmatprep.mubr.msk.f32.mxu0 %vm253_vm1, %v244_v11  ;;  %703 = vmatpush3.msra.mxu1 %v337_v20 }
  0x1f   : > { %v457_v15 = vstv %s456_s26  ;;  %694 = vmatmul.mubr.msk.f32.vlgmr.msra.gmra.mxu0 %vm253_vm1, %v245_v12 }
  0x20   : > { %vm975_vm4 = vcmp.eq.s32.totalorder %v457_v15, 1 }
  0x21   : > { %vm459_vm5 = vmand %vm967_vm2, %vm975_vm4 }
  0x22   : > { %vm460_vm6 = vmand %vm971_vm3, %vm975_vm4 }
  0xdf   : > { %v695_v22 = vpop.f32.mrf.mxu0 }
  0xe0   : > { %v332_v23 = vadd.f32 %v695_v22, %v657_v21 }
  0xe1   : > { %v326_v24 = vpop.f32.mrf.mxu0 }
  0xe2   : > { %v327_v25 = vadd.f32 %v657_v21, %v326_v24  ;;  %v336_v27 = vmax.f32 %v332_v23, 0.0 }
  0xe4   : > { %v335_v26 = vmax.f32 %v327_v25, 0.0 }
  0xe6   : > { %704 = vmatprep.mubr.msk.f32.mxu1 %vm346_vm7, %v335_v26 }
  0xe7   : > { %705 = vmatmul.mubr.msk.f32.vlgmr.msra.gmra.mxu1 %vm346_vm7, %v336_v27 }
 0x1a7   : > { %v706_v29 = vpop.f32.mrf.mxu1 }
 0x1a8   : > { %v425_v30 = vadd.f32 %v706_v29, %v660_v28 }
 0x1a9   : > { %v419_v31 = vpop.f32.mrf.mxu1 }
 0x1aa   : > { %v420_v32 = vadd.f32 %v660_v28, %v419_v31  ;;  %v429_v33 = vmax.f32 %v425_v30, 0.0 }
 0x1ac   : > { %v428_v34 = vmax.f32 %v420_v32, 0.0  ;;  %v436_v38 = vmul.f32 %v663_v35, %v429_v33 }
 0x1ae   : > { %v435_v36 = vmul.f32 %v663_v35, %v428_v34  ;;  %v440_v39 = vsel %vm346_vm7, %v436_v38, 0.0 }
 0x1b0   : > { %v437_v37 = vsel %vm346_vm7, %v435_v36, 0.0 }
 0x1b1   : > { %438 = vadd.xlane.f32.xlu0 %v437_v37 }
 0x1b5   : > { %441 = vadd.xlane.f32.xlu0 %v440_v39 }
 0x23a   : > { %v439_v40 = vpop.xlane.xlu0 %438  ;;  %463 = sbr.rel (!%p220_p11) target bundleno = 593 (0x251), region = 44 }
 0x23b   : > { %v465_v42 = vsel (%p220_p11), %vm459_vm5, %v439_v40, 0.0 }
 0x23e   : > { %v442_v41 = vpop.xlane.xlu0 %441 }
 0x23f   : > { %v466_v43 = vsel %vm460_vm6, %v442_v41, 0.0 }
 0x240   : > { %v467_v44 = vadd.f32 %v466_v43, %v465_v42 }
 0x242   : > { %v468_v45 = vrot.slane %v467_v44, 4 }
 0x244   : > { %v469_v46 = vadd.f32 %v468_v45, %v467_v44 }
 0x246   : > { %v470_v47 = vrot.slane %v469_v46, 2 }
 0x248   : > { %v471_v48 = vadd.f32 %v470_v47, %v469_v46 }
 0x24a   : > { %v472_v49 = vrot.slane %v471_v48, 1 }
 0x24c   : > { %v473_v51 = vadd.f32 %v472_v49, %v471_v48 }
 0x24e   : > { %v474_v52 = vadd.f32 %v473_v51, %v464_v50 }
 0x250   : > { %476 = vst.msk [vmem:[#allocation2] sm:$0x1] %vm235_vm0, %v474_v52 }
 0x251 PF: > { %p666_p0 = scmp.ge.s32.totalorder %s841_s18, 1 }
 0x252   : > { %v481_v53 = vsel (%p666_p0), %vm459_vm5, %v439_v40, -inf  ;;  %v482_v54 = vsel (%p666_p0), %vm460_vm6, %v442_v41, -inf  ;;  %v483_v61 = vld [vmem:[#allocation3] sm:$0x1] (%p666_p0)  ;;  %v500_v63 = vsub.s32 (%p666_p0), 0, %v953_v5  ;;  %vm509_vm8 = vcmask (%p666_p0), 7168  }
 0x253   : > { %480 = sbr.rel (!%p666_p0) target bundleno = 650 (0x28a), region = 48  ;;  %v484_v55 = vmax.f32 (%p666_p0), %v481_v53, %v482_v54  ;;  %v495_v18 = vld [vmem:[#allocation4] sm:$0x1] (%p666_p0) }
 0x255   : > { %v485_v56 = vrot.slane (%p666_p0), %v484_v55, 4 }
 0x257   : > { %v486_v57 = vmax.f32 (%p666_p0), %v484_v55, %v485_v56 }
 0x259   : > { %v487_v58 = vrot.slane %v486_v57, 2 }
 0x25b   : > { %v488_v59 = vmax.f32 %v486_v57, %v487_v58 }
 0x25d   : > { %v489_v60 = vrot.slane %v488_v59, 1 }
 0x25f   : > { %v490_v62 = vmax.f32 %v488_v59, %v489_v60 }
 0x261   : > { %v491_v0 = vmax.f32 %v483_v61, %v490_v62 }
 0x263   : > { %v501_v1 = vrot.slane %v491_v0, %v500_v63  ;;  %522 = vst.msk [vmem:[#allocation3] sm:$0x1] %vm235_vm0, %v491_v0  ;;  %v492_v7 = vsub.f32 %v483_v61, %v491_v0 }
 0x265   : > { %v503_v2 = vsub.f32 %v481_v53, %v501_v1  ;;  %v504_v3 = vsub.f32 %v482_v54, %v501_v1  ;;  %v493_v8 = vmul.f32 1.442695, %v492_v7 }
 0x267   : > { %v505_v4 = vmul.f32 1.442695, %v503_v2  ;;  %v507_v6 = vmul.f32 1.442695, %v504_v3 }
 0x269   : > { %765 = vpow2.f32 %v505_v4 }
 0x26a   : > { %767 = vpow2.f32 %v507_v6 }
 0x26b   : > { %769 = vpow2.f32 %v493_v8 }
 0x276   : > { %v766_v9 = vpop.eup %765 }
 0x277   : > { %v768_v10 = vpop.eup %767  ;;  %v510_v11 = vsel %vm509_vm8, %v766_v9, 0.0 }
 0x278   : > { %v511_v12 = vsel %vm509_vm8, %v768_v10, 0.0  ;;  %v770_v17 = vpop.eup %769 }
 0x279   : > { %v512_v13 = vadd.f32 %v511_v12, %v510_v11  ;;  %v496_v20 = vmul.f32 %v770_v17, %v495_v18 }
 0x27b   : > { %v513_v14 = vrot.slane %v512_v13, 4 }
 0x27d   : > { %v514_v15 = vadd.f32 %v513_v14, %v512_v13 }
 0x27f   : > { %v515_v16 = vrot.slane %v514_v15, 2 }
 0x281   : > { %v516_v19 = vadd.f32 %v515_v16, %v514_v15 }
 0x283   : > { %v517_v21 = vrot.slane %v516_v19, 1 }
 0x285   : > { %v518_v22 = vadd.f32 %v517_v21, %v516_v19 }
 0x287   : > { %v519_v23 = vadd.f32 %v518_v22, %v496_v20 }
 0x289   : > { %521 = vst.msk [vmem:[#allocation4] sm:$0x1] %vm235_vm0, %v519_v23 }
 0x28a PF: > { %v670_v24 = vld [vmem:[#allocation2] ss:$0 sm:$0xff]  ;;  %v853_v25 = vmov 0   ;;  %v671_v27 = vld [vmem:[#allocation3] ss:$0 sm:$0xff]  ;;  %vm526_vm9 = vcmp.eq.s32.totalorder %v953_v5, 0 }
 0x28b   : > { %771 = vset.pattern.permute.xlu0 %v853_v25  ;;  %772 = vset.pattern.permute.xlu1 %v853_v25  ;;  %vm538_vm10 = vcmp.eq.s32.totalorder %v953_v5, 1  ;;  %vm551_vm11 = vcmp.eq.s32.totalorder %v953_v5, 2  ;;  %s674_s5 = sshll.u32 %s841_s18, 7  ;;  %s579_s7 = sshll.u32 %s218_s30, 4  ;;  %s580_s7 = int_to_ptr.vmem [resolvable:$true] %s579_s7 }
 0x28c   : > { %534 = vperm.xlu0 %771, %v670_v24   ;;  %s577_s10 = scalar_lea.hbm %s1091_s4, %s674_s5  ;;  %s566_s11 = scalar_lea.sflag [#allocation6], %s216_s29 }
 0x28d   : > { %s773_s12 = scalar_lea.vmem %s580_s7, 128  ;;  %s854_s13 = smov [#allocation5]  }
 0x28e   : > { %p774_p1 = scmp.ne.s32.totalorder %s580_s7, %s773_s12  ;;  %s777_s18 = sshll.u32 %s854_s13, 4  ;;  %s778_s18 = int_to_ptr.vmem [resolvable:$false] %s777_s18 }
 0x28f   : > { %s779_s14 = scalar_lea.vmem %s778_s18, 256  ;;  %p780_p5 = scmp.lt.s32.totalorder %s580_s7, %s778_s18 }
 0x290   : > { %v672_v26 = vld [vmem:[#allocation4] ss:$0 sm:$0xff]  ;;  %546 = vperm.xlu0 %771, %v671_v27   ;;  %p775_p2 = pnand %p774_p1, %p920_p4  ;;  %p781_p6 = scmp.lt.s32.totalorder %s779_s14, %s773_s12 }
 0x291   : > { %559 = vperm.xlu1 %772, %v672_v26  }
 0x292   : > { %p776_p3 = pneg %p775_p2  ;;  %p782_p7 = por %p781_p6, %p780_p5 }
 0x294   : > { %p783_p9 = pnand %p782_p7, %p776_p3 }
 0x307   : > { %v535_v28 = vpop.permute.xlu0 %534 }
 0x308   : > { %v537_v31 = vsel %vm526_vm9, %v535_v28, 0.0 }
 0x30b   : > { %v547_v30 = vpop.permute.xlu0 %546 }
 0x30c   : > { %v560_v29 = vpop.permute.xlu1 %559  ;;  %v549_v32 = vsel %vm538_vm10, %v547_v30, 0.0 }
 0x30d   : > { %v562_v33 = vsel %vm551_vm11, %v560_v29, 0.0  ;;  %v550_v34 = vadd.f32 %v549_v32, %v537_v31 }
 0x30f   : > { %v563_v35 = vadd.f32 %v562_v33, %v550_v34 }
 0x311   : > { %564 = vst [vmem:[%s218_s30] sm:$0xff] %v563_v35 }
 0x312   : > { %786 = shalt.err (!%p783_p9)
}
 0x313   : > { %s787_s21 = scalar_lea.hbm %s577_s10, 128  ;;  %s791_s22 = scalar_lea.hbm %s1091_s4, 256 }
 0x314   : > { %p788_p10 = scmp.ne.s32.totalorder %s577_s10, %s787_s21  ;;  %p792_p13 = scmp.lt.s32.totalorder %s577_s10, %s1091_s4 }
 0x315   : > { %p793_p0 = scmp.lt.s32.totalorder %s791_s22, %s787_s21 }
 0x316   : > { %p789_p11 = pnand %p788_p10, %p920_p4 }
 0x317   : > { %p794_p1 = por %p793_p0, %p792_p13 }
 0x318   : > { %p790_p12 = pneg %p789_p11 }
 0x31a   : > { %p795_p2 = pnand %p794_p1, %p790_p12 }
 0x31c   : > { %798 = shalt.err (!%p795_p2)
}
 0x31d   : > { %707 = dma.vmem_to_hbm [thread:$0]  (%p920_p4), %s580_s7, 128, %s577_s10, %s566_s11  }
 0x31e PF: > { %p713_p3 = scmp.ge.s32.totalorder %s849_s20, 2  ;;  %s591_s30 = sand.u32 1, %s829_s15  }
 0x31f   : > { %s592_s5 = scalar_lea.sflag [#allocation6], %s591_s30 }
 0x320   : > { %p710_p5 = pnand %p713_p3, %p927_p8 }
 0x322   : > { %p711_p6 = pneg %p710_p5 }
 0x324   : > { %824 = dma.done.wait (%p711_p6), %s592_s5, 128  }
 0x325   : > { %826 = vsyncadd (%p711_p6), %s592_s5, 4294967168  ;;  %s17_s20 = sadd.s32 1, %s849_s20   ;;  %s1100_s15 = smov %s833_s16 }
 0x326   : > { %p14_p7 = scmp.ge.s32.totalorder %s17_s20, 4   ;;  %s1101_s16 = smov %s837_s17 }
 0x327   : > { %s1102_s17 = smov %s933_s28  ;;  %s1103_s18 = smov %s845_s19 }
 0x328   : > { %s1104_s19 = smov %s1106_s23  ;;  %16 = sbr.rel (!%p14_p7) target bundleno = 4 (0x4), region = 87 }
 0x32d   :  { %597 = vsyncpa [#allocation6], 1 }
 0x32e   :  { %599 = vsyncpa [#allocation6 + $0x1], 1 }

// kernel: tpu_custom_call.1
= control target key start
LH: loop header
LB: loop body
LE: loop exit
PB: predicated region body
PF: predicated region fallthrough
CT: control target
= control target key end

     0   :  { %9 = vsyncpa [#allocation6], 0  ;;  %s1087_s0 = inlined_call_operand.vmem [shape: f32[32,16], index: 0, kind: input, shape index: {}]   ;;  %s1088_s1 = inlined_call_operand.vmem [shape: f32[16,32], index: 1, kind: input, shape index: {}]   ;;  %s1089_s2 = inlined_call_operand.vmem [shape: f32[32,32], index: 2, kind: input, shape index: {}]   ;;  %s1090_s3 = inlined_call_operand.vmem [shape: f32[3,128], index: 3, kind: input, shape index: {}]   ;;  %s1091_s4 = inlined_call_operand.hbm [shape: f32[2,8,128], index: 4, kind: output, shape index: {}]  }
   0x1   :  { %11 = vsyncpa [#allocation6 + $0x1], 0  ;;  %s880_s15 = smov 0   ;;  %s882_s16 = smov 0  }
   0x2   :  { %s884_s17 = smov 0   ;;  %s886_s18 = smov 0  }
   0x3   :  { %s888_s19 = smov 0   ;;  %s890_s20 = smov 0  }
   0x4 LB: > { %s646_s21 = sadd.s32 4294967295, %s849_s20   ;;  %s647_s22 = sadd.s32 4294967294, %s849_s20   ;;  %s849_s20 = sphi %s890_s20, %s17_s20   ;;  %s845_s19 = sphi %s888_s19, %s1104_s19   ;;  %s841_s18 = sphi %s886_s18, %s1103_s18   ;;  %s837_s17 = sphi %s884_s17, %s1102_s17   ;;  %s833_s16 = sphi %s882_s16, %s1101_s16   ;;  %s829_s15 = sphi %s880_s15, %s1100_s15  }
   0x5   : > { %s29_s23 = sadd.s32 1, %s845_s19  ;;  %s131_s24 = sadd.s32 1, %s837_s17 }
   0x6   : > { %p31_p0 = scmp.ge.s32.totalorder %s29_s23, 2  ;;  %p141_p1 = scmp.ne.s32.totalorder %s837_s17, %s833_s16 }
   0x7   : > { %p142_p2 = scmp.eq.s32.totalorder %s646_s21, 1  ;;  %p147_p3 = scmp.ne.s32.totalorder %s833_s16, %s829_s15 }
   0x8   : > { %s1106_s23 = smov (%p31_p0, %s29_s23), 0  ;;  %p148_p5 = scmp.eq.s32.totalorder %s647_s22, 1 }
   0x9   : > { %p920_p4 = por %p142_p2, %p141_p1  ;;  %s128_s26 = ssub.s32 %s845_s19, %s1106_s23 }
   0xa   : > { %p650_p6 = scmp.ge.s32.totalorder %s849_s20, 1  ;;  %p129_p7 = scmp.eq.s32.totalorder %s128_s26, 0 }
   0xb   : > { %p927_p8 = por %p148_p5, %p147_p3  ;;  %p190_p9 = scmp.lt.s32.totalorder %s849_s20, 3 }
   0xc   : > { %s933_s28 = scalar_select %p129_p7, %s837_s17, %s131_s24  }
   0xd   : > { %p191_p10 = pnand %p650_p6, %p190_p9 }
   0xe   : > { %s216_s29 = sand.u32 (!%p191_p10), 1, %s833_s16   ;;  %p220_p11 = scmp.lt.s32.totalorder (!%p191_p10), %s841_s18, 1 }
   0xf   : > { %194 = sbr.rel (%p191_p10) target bundleno = 798 (0x31e), region = 36  ;;  %s941_s6 = sshll.u32 (!%p191_p10), %s216_s29, 3 }
  0x10   : > { %p240_p13 = scmp.lt.s32.totalorder (!%p191_p10), %s841_s18, 2  ;;  %s218_s30 = scalar_lea.vmem (!%p191_p10), [#allocation5], %s941_s6 }
  0x14   : > { %vm235_vm0 = vcmask 0   ;;  %v247_v0 = vld [vmem:[%s1088_s1 + $0x8] sm:$0xff]  ;;  %v446_v1 = vlaneseq  ;;  %v851_v2 = vmov 0.0   ;;  %v852_v3 = vmov -1e+30   ;;  %v246_v4 = vld [vmem:[%s1088_s1] sm:$0xff] }
  0x15   : > { %236 = vst.msk [vmem:[#allocation2] sm:$0x1] %vm235_vm0, %v851_v2  ;;  %237 = vst.msk [vmem:[#allocation4] sm:$0x1] %vm235_vm0, %v851_v2  ;;  %689 = vmatprep.subr.mxu0 %v247_v0  ;;  %s221_s9 = scalar_select %p220_p11, %s841_s18, 1  ;;  %vm253_vm1 = vcmask 130048  }
  0x16   : > { %238 = vst.msk [vmem:[#allocation3] sm:$0x1] %vm235_vm0, %v852_v3  ;;  %690 = vmatpush3.msra.mxu0 %v247_v0  ;;  %v953_v5 = vshrl.u32 %v446_v1, 7  ;;  %s452_s10 = scalar_select %p220_p11, 8, 16  ;;  %v340_v17 = vld [vmem:[%s1089_s2 + $0x18] sm:$0xff] }
  0x17   : > { %691 = vmatprep.subr.mxu0 %v246_v4  ;;  %s652_s11 = sshll.u32 %s221_s9, 1  ;;  %s664_s12 = sadd.s32 4294967295, %s221_s9  ;;  %696 = vmatprep.subr.mxu1 %v340_v17  ;;  %v339_v18 = vld [vmem:[%s1089_s2 + $0x10] sm:$0xff]  ;;  %v338_v19 = vld [vmem:[%s1089_s2 + $0x8] sm:$0xff]  ;;  %v337_v20 = vld [vmem:[%s1089_s2] sm:$0xff]  ;;  %vm346_vm7 = vcmask 261120  }
  0x18   : > { %692 = vmatpush3.msra.mxu0 %v246_v4  ;;  %p223_p12 = scmp.lt.s32.totalorder %s652_s11, 3  ;;  %s1108_s9 = smov (!%p220_p11, %s221_s9), %s664_s12  ;;  %v448_v6 = vadd.s32 8, %v953_v5  ;;  %v453_v8 = vstv %s452_s10  ;;  %697 = vmatpush3.msra.mxu1 %v340_v17  ;;  %v657_v21 = vld [vmem:[%s1090_s3 + $0x1] ss:$0 sm:$0xff]  ;;  %v660_v28 = vld [vmem:[%s1090_s3 + $0x2] ss:$0 sm:$0xff] }
  0x19   : > { %s665_s13 = sshll.u32 %s1108_s9, 4  ;;  %698 = vmatprep.subr.mxu1 %v339_v18  ;;  %v663_v35 = vld [vmem:[%s1090_s3] ss:$0 sm:$0xff] }
  0x1a   : > { %s1110_s11 = smov (!%p223_p12, %s652_s11), 3  ;;  %v449_v7 = vstv %s665_s13  ;;  %699 = vmatpush3.msra.mxu1 %v339_v18 }
  0x1b   : > { %s653_s14 = sshll.u32 %s1110_s11, 3  ;;  %v450_v9 = vadd.s32 %v449_v7, %v953_v5  ;;  %v451_v10 = vadd.s32 %v449_v7, %v448_v6  ;;  %700 = vmatprep.subr.mxu1 %v338_v19 }
  0x1c   : > { %s226_s24 = scalar_lea.vmem %s1087_s0, %s653_s14  ;;  %701 = vmatpush3.msra.mxu1 %v338_v19  ;;  %v464_v50 = vld [vmem:[#allocation2] sm:$0x1] (%p220_p11) }
  0x1d   : > { %v244_v11 = vld [vmem:[%s226_s24] sm:$0xff]  ;;  %v245_v12 = vld [vmem:[%s226_s24 + $0x8] sm:$0xff]  ;;  %s456_s26 = scalar_select %p240_p13, 1, 0  ;;  %vm967_vm2 = vcmp.lt.s32.totalorder %v450_v9, %v453_v8  ;;  %vm971_vm3 = vcmp.lt.s32.totalorder %v451_v10, %v453_v8  ;;  %702 = vmatprep.subr.mxu1 %v337_v20 }
  0x1e   : > { %693 = vmatprep.mubr.msk.f32.mxu0 %vm253_vm1, %v244_v11  ;;  %703 = vmatpush3.msra.mxu1 %v337_v20 }
  0x1f   : > { %v457_v15 = vstv %s456_s26  ;;  %694 = vmatmul.mubr.msk.f32.vlgmr.msra.gmra.mxu0 %vm253_vm1, %v245_v12 }
  0x20   : > { %vm975_vm4 = vcmp.eq.s32.totalorder %v457_v15, 1 }
  0x21   : > { %vm459_vm5 = vmand %vm967_vm2, %vm975_vm4 }
  0x22   : > { %vm460_vm6 = vmand %vm971_vm3, %vm975_vm4 }
  0xdf   : > { %v695_v22 = vpop.f32.mrf.mxu0 }
  0xe0   : > { %v332_v23 = vadd.f32 %v695_v22, %v657_v21 }
  0xe1   : > { %v326_v24 = vpop.f32.mrf.mxu0 }
  0xe2   : > { %v327_v25 = vadd.f32 %v657_v21, %v326_v24  ;;  %v336_v27 = vmax.f32 %v332_v23, 0.0 }
  0xe4   : > { %v335_v26 = vmax.f32 %v327_v25, 0.0 }
  0xe6   : > { %704 = vmatprep.mubr.msk.f32.mxu1 %vm346_vm7, %v335_v26 }
  0xe7   : > { %705 = vmatmul.mubr.msk.f32.vlgmr.msra.gmra.mxu1 %vm346_vm7, %v336_v27 }
 0x1a7   : > { %v706_v29 = vpop.f32.mrf.mxu1 }
 0x1a8   : > { %v425_v30 = vadd.f32 %v706_v29, %v660_v28 }
 0x1a9   : > { %v419_v31 = vpop.f32.mrf.mxu1 }
 0x1aa   : > { %v420_v32 = vadd.f32 %v660_v28, %v419_v31  ;;  %v429_v33 = vmax.f32 %v425_v30, 0.0 }
 0x1ac   : > { %v428_v34 = vmax.f32 %v420_v32, 0.0  ;;  %v436_v38 = vmul.f32 %v663_v35, %v429_v33 }
 0x1ae   : > { %v435_v36 = vmul.f32 %v663_v35, %v428_v34  ;;  %v440_v39 = vsel %vm346_vm7, %v436_v38, 0.0 }
 0x1b0   : > { %v437_v37 = vsel %vm346_vm7, %v435_v36, 0.0 }
 0x1b1   : > { %438 = vadd.xlane.f32.xlu0 %v437_v37 }
 0x1b5   : > { %441 = vadd.xlane.f32.xlu0 %v440_v39 }
 0x23a   : > { %v439_v40 = vpop.xlane.xlu0 %438  ;;  %463 = sbr.rel (!%p220_p11) target bundleno = 593 (0x251), region = 44 }
 0x23b   : > { %v465_v42 = vsel (%p220_p11), %vm459_vm5, %v439_v40, 0.0 }
 0x23e   : > { %v442_v41 = vpop.xlane.xlu0 %441 }
 0x23f   : > { %v466_v43 = vsel %vm460_vm6, %v442_v41, 0.0 }
 0x240   : > { %v467_v44 = vadd.f32 %v466_v43, %v465_v42 }
 0x242   : > { %v468_v45 = vrot.slane %v467_v44, 4 }
 0x244   : > { %v469_v46 = vadd.f32 %v468_v45, %v467_v44 }
 0x246   : > { %v470_v47 = vrot.slane %v469_v46, 2 }
 0x248   : > { %v471_v48 = vadd.f32 %v470_v47, %v469_v46 }
 0x24a   : > { %v472_v49 = vrot.slane %v471_v48, 1 }
 0x24c   : > { %v473_v51 = vadd.f32 %v472_v49, %v471_v48 }
 0x24e   : > { %v474_v52 = vadd.f32 %v473_v51, %v464_v50 }
 0x250   : > { %476 = vst.msk [vmem:[#allocation2] sm:$0x1] %vm235_vm0, %v474_v52 }
 0x251 PF: > { %p666_p0 = scmp.ge.s32.totalorder %s841_s18, 1 }
 0x252   : > { %v481_v53 = vsel (%p666_p0), %vm459_vm5, %v439_v40, -inf  ;;  %v482_v54 = vsel (%p666_p0), %vm460_vm6, %v442_v41, -inf  ;;  %v483_v61 = vld [vmem:[#allocation3] sm:$0x1] (%p666_p0)  ;;  %v500_v63 = vsub.s32 (%p666_p0), 0, %v953_v5  ;;  %vm509_vm8 = vcmask (%p666_p0), 7168  }
 0x253   : > { %480 = sbr.rel (!%p666_p0) target bundleno = 650 (0x28a), region = 48  ;;  %v484_v55 = vmax.f32 (%p666_p0), %v481_v53, %v482_v54  ;;  %v495_v18 = vld [vmem:[#allocation4] sm:$0x1] (%p666_p0) }
 0x255   : > { %v485_v56 = vrot.slane (%p666_p0), %v484_v55, 4 }
 0x257   : > { %v486_v57 = vmax.f32 (%p666_p0), %v484_v55, %v485_v56 }
 0x259   : > { %v487_v58 = vrot.slane %v486_v57, 2 }
 0x25b   : > { %v488_v59 = vmax.f32 %v486_v57, %v487_v58 }
 0x25d   : > { %v489_v60 = vrot.slane %v488_v59, 1 }
 0x25f   : > { %v490_v62 = vmax.f32 %v488_v59, %v489_v60 }
 0x261   : > { %v491_v0 = vmax.f32 %v483_v61, %v490_v62 }
 0x263   : > { %v501_v1 = vrot.slane %v491_v0, %v500_v63  ;;  %522 = vst.msk [vmem:[#allocation3] sm:$0x1] %vm235_vm0, %v491_v0  ;;  %v492_v7 = vsub.f32 %v483_v61, %v491_v0 }
 0x265   : > { %v503_v2 = vsub.f32 %v481_v53, %v501_v1  ;;  %v504_v3 = vsub.f32 %v482_v54, %v501_v1  ;;  %v493_v8 = vmul.f32 1.442695, %v492_v7 }
 0x267   : > { %v505_v4 = vmul.f32 1.442695, %v503_v2  ;;  %v507_v6 = vmul.f32 1.442695, %v504_v3 }
 0x269   : > { %765 = vpow2.f32 %v505_v4 }
 0x26a   : > { %767 = vpow2.f32 %v507_v6 }
 0x26b   : > { %769 = vpow2.f32 %v493_v8 }
 0x276   : > { %v766_v9 = vpop.eup %765 }
 0x277   : > { %v768_v10 = vpop.eup %767  ;;  %v510_v11 = vsel %vm509_vm8, %v766_v9, 0.0 }
 0x278   : > { %v511_v12 = vsel %vm509_vm8, %v768_v10, 0.0  ;;  %v770_v17 = vpop.eup %769 }
 0x279   : > { %v512_v13 = vadd.f32 %v511_v12, %v510_v11  ;;  %v496_v20 = vmul.f32 %v770_v17, %v495_v18 }
 0x27b   : > { %v513_v14 = vrot.slane %v512_v13, 4 }
 0x27d   : > { %v514_v15 = vadd.f32 %v513_v14, %v512_v13 }
 0x27f   : > { %v515_v16 = vrot.slane %v514_v15, 2 }
 0x281   : > { %v516_v19 = vadd.f32 %v515_v16, %v514_v15 }
 0x283   : > { %v517_v21 = vrot.slane %v516_v19, 1 }
 0x285   : > { %v518_v22 = vadd.f32 %v517_v21, %v516_v19 }
 0x287   : > { %v519_v23 = vadd.f32 %v518_v22, %v496_v20 }
 0x289   : > { %521 = vst.msk [vmem:[#allocation4] sm:$0x1] %vm235_vm0, %v519_v23 }
 0x28a PF: > { %v670_v24 = vld [vmem:[#allocation2] ss:$0 sm:$0xff]  ;;  %v853_v25 = vmov 0   ;;  %v671_v27 = vld [vmem:[#allocation3] ss:$0 sm:$0xff]  ;;  %vm526_vm9 = vcmp.eq.s32.totalorder %v953_v5, 0 }
 0x28b   : > { %771 = vset.pattern.permute.xlu0 %v853_v25  ;;  %772 = vset.pattern.permute.xlu1 %v853_v25  ;;  %vm538_vm10 = vcmp.eq.s32.totalorder %v953_v5, 1  ;;  %vm551_vm11 = vcmp.eq.s32.totalorder %v953_v5, 2  ;;  %s674_s5 = sshll.u32 %s841_s18, 7  ;;  %s579_s7 = sshll.u32 %s218_s30, 4  ;;  %s580_s7 = int_to_ptr.vmem [resolvable:$true] %s579_s7 }
 0x28c   : > { %534 = vperm.xlu0 %771, %v670_v24   ;;  %s577_s10 = scalar_lea.hbm %s1091_s4, %s674_s5  ;;  %s566_s11 = scalar_lea.sflag [#allocation6], %s216_s29 }
 0x28d   : > { %s773_s12 = scalar_lea.vmem %s580_s7, 128  ;;  %s854_s13 = smov [#allocation5]  }
 0x28e   : > { %p774_p1 = scmp.ne.s32.totalorder %s580_s7, %s773_s12  ;;  %s777_s18 = sshll.u32 %s854_s13, 4  ;;  %s778_s18 = int_to_ptr.vmem [resolvable:$false] %s777_s18 }
 0x28f   : > { %s779_s14 = scalar_lea.vmem %s778_s18, 256  ;;  %p780_p5 = scmp.lt.s32.totalorder %s580_s7, %s778_s18 }
 0x290   : > { %v672_v26 = vld [vmem:[#allocation4] ss:$0 sm:$0xff]  ;;  %546 = vperm.xlu0 %771, %v671_v27   ;;  %p775_p2 = pnand %p774_p1, %p920_p4  ;;  %p781_p6 = scmp.lt.s32.totalorder %s779_s14, %s773_s12 }
 0x291   : > { %559 = vperm.xlu1 %772, %v672_v26  }
 0x292   : > { %p776_p3 = pneg %p775_p2  ;;  %p782_p7 = por %p781_p6, %p780_p5 }
 0x294   : > { %p783_p9 = pnand %p782_p7, %p776_p3 }
 0x307   : > { %v535_v28 = vpop.permute.xlu0 %534 }
 0x308   : > { %v537_v31 = vsel %vm526_vm9, %v535_v28, 0.0 }
 0x30b   : > { %v547_v30 = vpop.permute.xlu0 %546 }
 0x30c   : > { %v560_v29 = vpop.permute.xlu1 %559  ;;  %v549_v32 = vsel %vm538_vm10, %v547_v30, 0.0 }
 0x30d   : > { %v562_v33 = vsel %vm551_vm11, %v560_v29, 0.0  ;;  %v550_v34 = vadd.f32 %v549_v32, %v537_v31 }
 0x30f   : > { %v563_v35 = vadd.f32 %v562_v33, %v550_v34 }
 0x311   : > { %564 = vst [vmem:[%s218_s30] sm:$0xff] %v563_v35 }
 0x312   : > { %786 = shalt.err (!%p783_p9)
}
 0x313   : > { %s787_s21 = scalar_lea.hbm %s577_s10, 128  ;;  %s791_s22 = scalar_lea.hbm %s1091_s4, 256 }
 0x314   : > { %p788_p10 = scmp.ne.s32.totalorder %s577_s10, %s787_s21  ;;  %p792_p13 = scmp.lt.s32.totalorder %s577_s10, %s1091_s4 }
 0x315   : > { %p793_p0 = scmp.lt.s32.totalorder %s791_s22, %s787_s21 }
 0x316   : > { %p789_p11 = pnand %p788_p10, %p920_p4 }
 0x317   : > { %p794_p1 = por %p793_p0, %p792_p13 }
 0x318   : > { %p790_p12 = pneg %p789_p11 }
 0x31a   : > { %p795_p2 = pnand %p794_p1, %p790_p12 }
 0x31c   : > { %798 = shalt.err (!%p795_p2)
}
 0x31d   : > { %707 = dma.vmem_to_hbm [thread:$0]  (%p920_p4), %s580_s7, 128, %s577_s10, %s566_s11  }
 0x31e PF: > { %p713_p3 = scmp.ge.s32.totalorder %s849_s20, 2  ;;  %s591_s30 = sand.u32 1, %s829_s15  }
 0x31f   : > { %s592_s5 = scalar_lea.sflag [#allocation6], %s591_s30 }
 0x320   : > { %p710_p5 = pnand %p713_p3, %p927_p8 }
 0x322   : > { %p711_p6 = pneg %p710_p5 }
 0x324   : > { %824 = dma.done.wait (%p711_p6), %s592_s5, 128  }
 0x325   : > { %826 = vsyncadd (%p711_p6), %s592_s5, 4294967168  ;;  %s17_s20 = sadd.s32 1, %s849_s20   ;;  %s1100_s15 = smov %s833_s16 }
 0x326   : > { %p14_p7 = scmp.ge.s32.totalorder %s17_s20, 4   ;;  %s1101_s16 = smov %s837_s17 }
 0x327   : > { %s1102_s17 = smov %s933_s28  ;;  %s1103_s18 = smov %s845_s19 }
 0x328   : > { %s1104_s19 = smov %s1106_s23  ;;  %16 = sbr.rel (!%p14_p7) target bundleno = 4 (0x4), region = 87 }
 0x32d   :  { %597 = vsyncpa [#allocation6], 1 }
 0x32e   :  { %599 = vsyncpa [#allocation6 + $0x1], 1 }

</bundles_post_ra>
